<compile_context>
chip_gen: v7x
topology: tpu7x:2x2x1
jax: 0.10.0
libtpu: 0.0.40
codegen_flags: <defaults>
</compile_context>

<pallas_src>
import jax
import jax.numpy as jnp
from jax.experimental import pallas as pl
from jax.experimental.pallas import tpu as pltpu


def _normalize_kernel(sb_ref, x_ref, o_ref):
    # sb_ref : (blk_rows, 2) f32, column 0 = 1/std, column 1 = -mean/std
    # x_ref / o_ref : (blk_rows, blk_cols) lane-dense tiles.
    sb = sb_ref[...]
    scale = sb[:, 0:1]                       # (blk_rows, 1) -> lane broadcast
    bias = sb[:, 1:2]
    x = x_ref[...].astype(jnp.float32)
    o_ref[...] = (x * scale + bias).astype(o_ref.dtype)


def _choose_blocks(NC, HW, itemsize, target_bytes):
    """Pick (blk_rows, blk_cols) honoring (8,128) tiling and the VMEM budget."""
    row_bytes = HW * itemsize
    total_bytes = NC * row_bytes

    # --- Large spatial planes: tile the lane (H*W) axis as well. -------------
    if 8 * row_bytes > target_bytes and HW > 128:
        blk_rows = NC if NC < 8 else 8
        blk_cols = (target_bytes // (blk_rows * itemsize)) // 128 * 128
        blk_cols = int(min(max(128, blk_cols), HW))
        return blk_rows, blk_cols

    # --- Plane(s) fit in the lane axis: tile rows only. ----------------------
    blk_cols = HW
    rows_for_target = max(1, target_bytes // max(1, row_bytes))

    if rows_for_target >= NC:
        # Everything fits in one block.  On mid/large inputs still split into
        # two row-steps so v7x's two TensorCores both get work.
        if total_bytes > (4 << 20) and NC >= 16:
            blk_rows = min(NC, ((NC + 1) // 2 + 7) // 8 * 8)
        else:
            blk_rows = NC
        return blk_rows, blk_cols

    blk_rows = min(max(8, (rows_for_target // 8) * 8), NC)
    # Prefer an even number of row-steps (v7x megacore); shrink by one 8-row
    # stripe at a time, but never below half the target block.
    steps = -(-NC // blk_rows)
    if steps > 1 and steps % 2 == 1:
        for cand in range(blk_rows - 8, blk_rows // 2 - 1, -8):
            if cand >= 8 and -(-NC // cand) % 2 == 0:
                blk_rows = cand
                break
    return blk_rows, blk_cols


def normalization(img, mean, std):
    """(img - mean[None,:,None,None]) / std[None,:,None,None] for NCHW img."""
    N, C, H, W = img.shape
    assert mean.shape == (C,) and std.shape == (C,)
    NC, HW = N * C, H * W

    # Float output even for integer image dtypes (uint8 etc.).
    out_dtype = img.dtype if jnp.issubdtype(img.dtype, jnp.floating) else jnp.float32

    # Lane-dense 2D view: row index encodes (n, c), columns are the plane.
    x = img.reshape(NC, HW)

    # Fold (x - mean) / std into x * (1/std) + (-mean/std); pack per-row
    # scale & bias into one (NC, 2) array -> a single tiny DMA per grid step.
    inv_std = (1.0 / std).astype(jnp.float32)
    neg_mean_over_std = (-mean / std).astype(jnp.float32)
    scale_bias = jnp.stack(
        [jnp.tile(inv_std, N), jnp.tile(neg_mean_over_std, N)], axis=1
    )  # (NC, 2) float32

    itemsize = jnp.dtype(img.dtype).itemsize
    target_bytes = 6 << 20                      # ~6 MiB of input per grid step
    blk_rows, blk_cols = _choose_blocks(NC, HW, itemsize, target_bytes)

    grid = (pl.cdiv(NC, blk_rows), pl.cdiv(HW, blk_cols))

    out2d = pl.pallas_call(
        _normalize_kernel,
        out_shape=jax.ShapeDtypeStruct((NC, HW), out_dtype),
        grid=grid,
        in_specs=[
            pl.BlockSpec((blk_rows, 2), lambda i, j: (i, 0)),         # scale/bias
            pl.BlockSpec((blk_rows, blk_cols), lambda i, j: (i, j)),  # img tile
        ],
        out_specs=pl.BlockSpec((blk_rows, blk_cols), lambda i, j: (i, j)),
        compiler_params=pltpu.CompilerParams(
            dimension_semantics=("parallel", "parallel"),
            # 2x(in+out) blocks ~= 24 MiB; 48 MiB covers v5e's 16 MiB scoped
            # default and fits v7x's 64 MiB physical VMEM with headroom.
            vmem_limit_bytes=48 << 20,
        ),
    )(scale_bias, x)

    return out2d.reshape(N, C, H, W)


if __name__ == "__main__":
    key = jax.random.PRNGKey(0)
    N, C, H, W = 2, 4, 16, 16

    img = jax.random.normal(key, (N, C, H, W), dtype=jnp.float32)

    # Deterministic per-channel "ImageNet-like" statistics (the PyTorch module
    # receives mean/std lists in __init__; constructed in-script here).
    mean = jnp.array([0.485, 0.456, 0.406, 0.5], dtype=jnp.float32)
    std = jnp.array([0.229, 0.224, 0.225, 0.25], dtype=jnp.float32)

    out = normalization(img, mean, std)
    out = jax.block_until_ready(out)

    # Reference check against plain JAX broadcasting semantics.
    ref = (img - mean[None, :, None, None]) / std[None, :, None, None]
    assert out.shape == (N, C, H, W)
    assert out.dtype == img.dtype
    assert jnp.allclose(out, ref, atol=1e-5, rtol=1e-5)

    print("KERNEL_OK")
</pallas_src>

<mosaic_0001>
module attributes {stable_mosaic.version = 11 : i64} {
  func.func @_normalize_kernel(%arg0: i32, %arg1: i32, %arg2: memref<8x2xf32, #tpu.memory_space<vmem>>, %arg3: memref<8x256xf32, #tpu.memory_space<vmem>>, %arg4: memref<8x256xf32, #tpu.memory_space<vmem>>) attributes {dimension_semantics = [#tpu.dimension_semantics<parallel>, #tpu.dimension_semantics<parallel>], iteration_bounds = array<i64: 1, 1>, scalar_prefetch = 0 : i64, scratch_operands = 0 : i64, tpu.core_type = #tpu.core_type<tc>, window_params = [{transform_indices = @transform_0, window_bounds = array<i64: 8, 2>}, {transform_indices = @transform_1, window_bounds = array<i64: 8, 256>}, {transform_indices = @transform_2, window_bounds = array<i64: 8, 256>}]} {
    %c0 = arith.constant 0 : index
    %c0_0 = arith.constant 0 : index
    %0 = vector.load %arg2[%c0, %c0_0] : memref<8x2xf32, #tpu.memory_space<vmem>>, vector<8x2xf32>
    %1 = vector.extract_strided_slice %0 {offsets = [0, 0], sizes = [8, 1], strides = [1, 1]} : vector<8x2xf32> to vector<8x1xf32>
    %2 = vector.extract_strided_slice %0 {offsets = [0, 1], sizes = [8, 1], strides = [1, 1]} : vector<8x2xf32> to vector<8x1xf32>
    %c0_1 = arith.constant 0 : index
    %c0_2 = arith.constant 0 : index
    %3 = vector.load %arg3[%c0_1, %c0_2] : memref<8x256xf32, #tpu.memory_space<vmem>>, vector<8x256xf32>
    %4 = vector.broadcast %1 : vector<8x1xf32> to vector<8x256xf32>
    %5 = arith.mulf %3, %4 : vector<8x256xf32>
    %6 = vector.broadcast %2 : vector<8x1xf32> to vector<8x256xf32>
    %7 = arith.addf %5, %6 : vector<8x256xf32>
    %c0_3 = arith.constant 0 : index
    %c0_4 = arith.constant 0 : index
    %8 = vector.load %arg4[%c0_3, %c0_4] : memref<8x256xf32, #tpu.memory_space<vmem>>, vector<8x256xf32>
    tpu.vector_store %arg4[%c0_3, %c0_4], %7 {strides = array<i32>} : memref<8x256xf32, #tpu.memory_space<vmem>>, vector<8x256xf32>,
    return
  }
  func.func @transform_0(%arg0: i32, %arg1: i32) -> (i32, i32) {
    %c0_i32 = arith.constant 0 : i32
    %c0_i32_0 = arith.constant 0 : i32
    return %arg0, %c0_i32 : i32, i32
  }
  func.func @transform_1(%arg0: i32, %arg1: i32) -> (i32, i32) {
    %c0_i32 = arith.constant 0 : i32
    return %arg0, %arg1 : i32, i32
  }
  func.func @transform_2(%arg0: i32, %arg1: i32) -> (i32, i32) {
    %c0_i32 = arith.constant 0 : i32
    return %arg0, %arg1 : i32, i32
  }
}

</mosaic_0001>

<bundles_post_ra>
// kernel: tpu_custom_call.1
= control target key start
LH: loop header
LB: loop body
LE: loop exit
PB: predicated region body
PF: predicated region fallthrough
CT: control target
= control target key end

     0   :  { %7 = vsyncpa [#allocation3], 0  ;;  %s157_s0 = inlined_call_operand.vmem [shape: f32[8,2], index: 0, kind: input, shape index: {}]   ;;  %s158_s1 = inlined_call_operand.hbm [shape: f32[8,256], index: 1, kind: input, shape index: {}]   ;;  %s159_s2 = inlined_call_operand.hbm [shape: f32[8,256], index: 2, kind: output, shape index: {}]  }
   0x1   :  { %8 = vsyncpa [#allocation4], 0  ;;  %s111_s9 = smov [#allocation2]   ;;  %s63_s13 = scalar_lea.hbm %s158_s1, 256 }
   0x2   :  { %s17_s10 = sshll.u32 %s111_s9, 4  ;;  %p64_p0 = scmp.ne.s32.totalorder %s158_s1, %s63_s13  ;;  %s18_s10 = int_to_ptr.vmem [resolvable:$true] %s17_s10 }
   0x3   :  { %p67_p1 = scmp.lt.u32.totalorder %s63_s13, %s158_s1 }
   0x5   :  { %p69_p2 = pnand %p67_p1, %p64_p0 }
   0x7   :  { %72 = shalt.err (!%p69_p2)
}
   0x8   :  { %s73_s18 = scalar_lea.vmem %s18_s10, 256  ;;  %p78_p4 = scmp.lt.s32.totalorder %s18_s10, %s18_s10 }
   0x9   :  { %p74_p3 = scmp.ne.s32.totalorder %s18_s10, %s73_s18  ;;  %p79_p5 = scmp.lt.s32.totalorder %s73_s18, %s73_s18 }
   0xb   :  { %p80_p6 = por %p79_p5, %p78_p4 }
   0xd   :  { %p81_p7 = pnand %p80_p6, %p74_p3 }
   0xf   :  { %84 = shalt.err (!%p81_p7)
}
  0x10   :  { %20 = dma.hbm_to_vmem [thread:$0]  %s158_s1, 256, %s18_s10, [#allocation3]  }
  0x11   :  { %107 = dma.done.wait [#allocation3], 256  }
  0x12   :  { %108 = vsyncadd [#allocation3], 4294967040  ;;  %v112_v0 = vmov 0   ;;  %v24_v1 = vld [vmem:[%s157_s0] sm:$0xff]  ;;  %v113_v2 = vmov 1   ;;  %v26_v5 = vld [vmem:[#allocation2 + $0x8] sm:$0xff] }
  0x13   :  { %61 = vset.pattern.permute.xlu0 %v112_v0  ;;  %v25_v4 = vld [vmem:[#allocation2] sm:$0xff]  ;;  %s114_s23 = smov [#allocation5]  }
  0x14   :  { %29 = vperm.xlu0 %61, %v24_v1   ;;  %s48_s24 = sshll.u32 %s114_s23, 4  ;;  %s49_s24 = int_to_ptr.vmem [resolvable:$true] %s48_s24 }
  0x15   :  { %s85_s1 = scalar_lea.vmem %s49_s24, 256  ;;  %p90_p9 = scmp.lt.s32.totalorder %s49_s24, %s49_s24 }
  0x16   :  { %p86_p8 = scmp.ne.s32.totalorder %s49_s24, %s85_s1  ;;  %p91_p10 = scmp.lt.s32.totalorder %s85_s1, %s85_s1 }
  0x18   :  { %62 = vset.pattern.permute.xlu0 %v113_v2  ;;  %p92_p11 = por %p91_p10, %p90_p9 }
  0x19   :  { %35 = vperm.xlu0 %62, %v24_v1  }
  0x1a   :  { %p93_p12 = pnand %p92_p11, %p86_p8 }
  0x93   :  { %v30_v3 = vpop.permute.xlu0 %29 }
  0x94   :  { %v32_v6 = vmul.f32 %v30_v3, %v25_v4  ;;  %v33_v7 = vmul.f32 %v30_v3, %v26_v5 }
  0x98   :  { %v36_v8 = vpop.permute.xlu0 %35 }
  0x99   :  { %v38_v9 = vadd.f32 %v36_v8, %v32_v6  ;;  %v39_v10 = vadd.f32 %v36_v8, %v33_v7 }
  0x9b   :  { %40 = vst [vmem:[#allocation5] sm:$0xff] %v38_v9  ;;  %41 = vst [vmem:[#allocation5 + $0x8] sm:$0xff] %v39_v10 }
  0x9c   :  { %96 = shalt.err (!%p93_p12)
}
  0x9d   :  { %s97_s26 = scalar_lea.hbm %s159_s2, 256 }
  0x9e   :  { %p98_p13 = scmp.ne.s32.totalorder %s159_s2, %s97_s26  ;;  %p101_p0 = scmp.lt.u32.totalorder %s97_s26, %s159_s2 }
  0xa0   :  { %p103_p1 = pnand %p101_p0, %p98_p13 }
  0xa2   :  { %106 = shalt.err (!%p103_p1)
}
  0xa3   :  { %51 = dma.vmem_to_hbm [thread:$0]  %s49_s24, 256, %s159_s2, [#allocation4]  }
  0xa4   :  { %109 = dma.done.wait [#allocation4], 256  }
  0xa5   :  { %110 = vsyncadd [#allocation4], 4294967040 }
  0xa6   :  { %55 = vsyncpa [#allocation3], 1 }
  0xa7   :  { %56 = vsyncpa [#allocation4], 1 }

</bundles_post_ra>
